<compile_context>
chip_gen: v5e
topology: v5e:2x2
jax: 0.10.0
libtpu: 0.0.40
codegen_flags: <defaults>
</compile_context>

<pallas_src>
import functools

import numpy as np
import jax
import jax.numpy as jnp
from jax.experimental import pallas as pl
from jax.experimental.pallas import tpu as pltpu


def _round_up(x, m):
    return -(-x // m) * m


def _pick_tile_rows(batch, feat_dim, itemsize, max_tile_bytes, row_align, n_pad):
    """Largest aligned row-tile under the per-block byte budget.

    The (single) ragged last tile is masked in-kernel, so we never fall back to
    tiny tiles just because the batch isn't divisible by a power of two."""
    bytes_per_row = max(1, feat_dim * itemsize)
    cap = (max_tile_bytes // bytes_per_row) // row_align * row_align
    # keep the in-kernel one-hot assignment matrix (n_pad, tile_rows) small
    cap_assign = ((1 << 20) // max(1, 4 * n_pad)) // row_align * row_align
    cap = max(row_align, min(cap, cap_assign))
    b_al = _round_up(batch, row_align)
    if b_al <= cap:
        return b_al                         # one block covers the whole batch
    # Prefer an aligned tile that divides the aligned batch (no ragged tail),
    # but never shrink the tile by more than 2x to get it.
    t = cap
    while t >= max(row_align, cap // 2):
        if b_al % t == 0:
            return t
        t -= row_align
    return cap


def _tcwrt_kernel(tgt_ref, feat_ref, loss_ref, correct_ref, acc_ref, *,
                  n, n_pad, chunk, tile_rows, batch, ragged, normalize_feature):
    """tgt_ref: (1, n_pad) i32; feat_ref: (tile_rows, D); acc_ref: (n_pad, D) f32.
    Grid axis 0 streams row-tiles of the batch (reduction axis, 'arbitrary')."""
    pid = pl.program_id(0)
    last = pl.num_programs(0) - 1

    @pl.when(pid == 0)
    def _init():
        acc_ref[...] = jnp.zeros_like(acc_ref)

    # ---- streamed part: accumulate per-center feature sums --------------------
    f = feat_ref[...].astype(jnp.float32)                        # (Tb, D)

    if ragged:
        # Zero rows whose global index is past the real batch.  Must be a
        # select on f itself (not a multiplier on `assign`): 0 * NaN from the
        # undefined out-of-bounds region would poison the whole accumulator.
        grow = pid * tile_rows + jax.lax.broadcasted_iota(
            jnp.int32, (tile_rows, 1), 0)
        f = jnp.where(grow < batch, f, 0.0)

    if normalize_feature:
        # exact divide (matches torch semantics); VALU is not the binding slot.
        nrm = jnp.sqrt(jnp.sum(f * f, axis=1, keepdims=True))
        f = f / (nrm + 1e-12)

    # one-hot assignment of each (global) row to its center; rows past the real
    # batch are already zeroed, so any spill into padded centers contributes 0.
    g = pid * tile_rows + jax.lax.broadcasted_iota(jnp.int32, (n_pad, tile_rows), 1)
    c = jax.lax.broadcasted_iota(jnp.int32, (n_pad, tile_rows), 0)
    lo = c * chunk
    assign = jnp.logical_and(g >= lo, g < lo + chunk).astype(jnp.float32)
    acc_ref[...] += jnp.dot(assign, f, preferred_element_type=jnp.float32)

    # ---- epilogue: tiny (n, n) triplet math, once ------------------------------
    @pl.when(pid == last)
    def _finalize():
        centers = acc_ref[...] * (1.0 / chunk)                   # (n_pad, D)
        if n_pad != n:
            crow = jax.lax.broadcasted_iota(jnp.int32, (n_pad, 1), 0)
            centers = jnp.where(crow < n, centers, 0.0)          # defensive

        sq = jnp.sum(centers * centers, axis=1, keepdims=True)   # (n_pad, 1)
        gram = jax.lax.dot_general(
            centers, centers, (((1,), (1,)), ((), ())),
            preferred_element_type=jnp.float32)                  # (n_pad, n_pad)
        dist2 = sq + jnp.transpose(sq) - 2.0 * gram
        dist = jnp.sqrt(jnp.maximum(dist2, 1e-12))               # clamp(1e-12).sqrt()

        t = tgt_ref[...]                                         # (1, n_pad)
        rows = jax.lax.broadcasted_iota(jnp.int32, (n_pad, n_pad), 0)
        cols = jax.lax.broadcasted_iota(jnp.int32, (n_pad, n_pad), 1)
        valid = jnp.logical_and(rows < n, cols < n)
        same = jnp.transpose(t) == t                             # (n_pad, n_pad)
        is_pos = jnp.logical_and(same, valid).astype(jnp.float32)
        is_neg = jnp.logical_and(jnp.logical_not(same), valid).astype(jnp.float32)

        dist_ap = dist * is_pos
        dist_an = dist * is_neg

        # softmax_weights(dist_ap, is_pos)
        max_ap = jnp.max(dist_ap * is_pos, axis=1, keepdims=True)
        e_ap = jnp.exp(dist_ap - max_ap) * is_pos
        w_ap = e_ap / (jnp.sum(e_ap, axis=1, keepdims=True) + 1e-6)
        furthest_positive = jnp.sum(dist_ap * w_ap, axis=1, keepdims=True)

        # softmax_weights(-dist_an, is_neg)
        max_an = jnp.max((-dist_an) * is_neg, axis=1, keepdims=True)
        e_an = jnp.exp(-dist_an - max_an) * is_neg
        w_an = e_an / (jnp.sum(e_an, axis=1, keepdims=True) + 1e-6)
        closest_negative = jnp.sum(dist_an * w_an, axis=1, keepdims=True)

        # SoftMarginLoss with y = 1:  mean_i log(1 + exp(-(cn_i - fp_i)))
        x = closest_negative - furthest_positive                 # (n_pad, 1)
        z = -x
        softplus = jnp.maximum(z, 0.0) + jnp.log(1.0 + jnp.exp(-jnp.abs(z)))

        row_valid = jax.lax.broadcasted_iota(jnp.int32, (n_pad, 1), 0) < n
        loss = jnp.sum(jnp.where(row_valid, softplus, 0.0),
                       axis=(0, 1), keepdims=True) * (1.0 / n)
        correct = jnp.sum(
            jnp.logical_and(row_valid, closest_negative >= furthest_positive
                            ).astype(jnp.int32),
            axis=(0, 1), keepdims=True)

        loss_ref[...] = loss
        correct_ref[...] = correct


def build_tcwrt_loss(labels, batch_size, feat_dim, *, normalize_feature=False,
                     feat_dtype=jnp.float32, tile_rows=None,
                     max_tile_bytes=8 << 20, feat_buffers=2):
    """Builds a jitted (feats) -> (loss, correct) function.

    All host-side glue (labels.unique(), target layout, tile sizing, VMEM
    budgeting) happens once here; per-call there are no device<->host round
    trips and no extra HBM copies (no host-side padding of feats)."""
    labels_np = np.asarray(labels)
    label_uni = np.unique(labels_np)                 # host-side glue, done ONCE
    label_num = int(label_uni.shape[0])
    n = 3 * label_num                                # 3 modality copies (TCWRT)
    assert batch_size % n == 0, "batch must split evenly into label_num*3 chunks"
    chunk = batch_size // n

    n_pad = _round_up(n, 8)
    targets_np = np.full((1, n_pad), np.iinfo(np.int32).min, dtype=np.int32)
    targets_np[0, :n] = np.concatenate([label_uni, label_uni, label_uni]).astype(np.int32)
    targets = jnp.asarray(targets_np)

    feat_dtype = jnp.dtype(feat_dtype)
    itemsize = feat_dtype.itemsize
    row_align = {4: 8, 2: 16, 1: 32}.get(itemsize, 8)   # sublane packing

    if tile_rows is None:
        tile_rows = _pick_tile_rows(batch_size, feat_dim, itemsize,
                                    max_tile_bytes, row_align, n_pad)
    else:
        tile_rows = max(row_align, _round_up(int(tile_rows), row_align))

    num_tiles = -(-batch_size // tile_rows)
    b_pad = num_tiles * tile_rows
    ragged = (b_pad != batch_size)        # ragged last tile handled in-kernel

    # Explicit VMEM budget: >= defaults on every generation, < v7x physical.
    block_bytes = tile_rows * feat_dim * itemsize
    acc_bytes = n_pad * _round_up(feat_dim, 128) * 4
    needed = max(int(feat_buffers), 2) * block_bytes + acc_bytes + (2 << 20)
    vmem_limit = int(min(max(needed, 32 << 20), 56 << 20))

    kernel = functools.partial(
        _tcwrt_kernel, n=n, n_pad=n_pad, chunk=chunk,
        tile_rows=tile_rows, batch=batch_size, ragged=ragged,
        normalize_feature=bool(normalize_feature))

    feat_spec_kwargs = {}
    if feat_buffers is not None and int(feat_buffers) > 2:
        # optional deeper pipelining (e.g. v6e with plenty of VMEM)
        feat_spec_kwargs["pipeline_mode"] = pl.Buffered(int(feat_buffers))
    feat_spec = pl.BlockSpec((tile_rows, feat_dim), lambda i: (i, 0),
                             **feat_spec_kwargs)

    call = pl.pallas_call(
        kernel,
        out_shape=(jax.ShapeDtypeStruct((1, 1), jnp.float32),
                   jax.ShapeDtypeStruct((1, 1), jnp.int32)),
        grid_spec=pltpu.PrefetchScalarGridSpec(
            num_scalar_prefetch=0,
            grid=(num_tiles,),
            in_specs=[pl.BlockSpec((1, n_pad), lambda i: (0, 0)),
                      feat_spec],
            out_specs=(pl.BlockSpec((1, 1), lambda i: (0, 0)),
                       pl.BlockSpec((1, 1), lambda i: (0, 0))),
            scratch_shapes=[pltpu.VMEM((n_pad, feat_dim), jnp.float32)]),
        compiler_params=pltpu.CompilerParams(
            dimension_semantics=("arbitrary",),    # grid axis is a reduction
            vmem_limit_bytes=vmem_limit),
    )

    @jax.jit
    def loss_fn(feats):
        f = feats.astype(feat_dtype)   # no-op when already the native dtype
        loss, correct = call(targets, f)
        return loss[0, 0], correct[0, 0]

    return loss_fn


if __name__ == "__main__":
    key = jax.random.PRNGKey(0)

    label_num = 4      # unique identities in the batch
    per_chunk = 2      # samples per (identity, modality) chunk
    D = 32             # feature dim
    n = 3 * label_num  # TCWRT uses three modality copies
    B = n * per_chunk  # 24

    feats = jax.random.normal(key, (B, D), dtype=jnp.float32)
    # Batch layout expected by the loss: three modality blocks, each grouped by
    # identity in sorted-label order (chunk i holds label_uni[i % label_num]).
    labels = np.tile(np.repeat(np.arange(label_num), per_chunk), 3).astype(np.int32)

    # ---- pure-numpy reference of the PyTorch semantics -------------------------
    def reference(feats_np, labels_np):
        feats_np = feats_np.astype(np.float64)
        label_uni = np.unique(labels_np)
        ln = len(label_uni)
        nn_ = 3 * ln
        ch = feats_np.shape[0] // nn_
        centers = feats_np.reshape(nn_, ch, -1).mean(axis=1)
        sq = (centers ** 2).sum(1, keepdims=True)
        d2 = sq + sq.T - 2.0 * centers @ centers.T
        dist = np.sqrt(np.clip(d2, 1e-12, None))
        tgt = np.concatenate([label_uni] * 3)
        is_pos = (tgt[:, None] == tgt[None, :]).astype(np.float64)
        is_neg = 1.0 - is_pos

        def smw(d, m):
            mv = (d * m).max(1, keepdims=True)
            e = np.exp(d - mv) * m
            return e / (e.sum(1, keepdims=True) + 1e-6)

        dist_ap = dist * is_pos
        dist_an = dist * is_neg
        fp = (dist_ap * smw(dist_ap, is_pos)).sum(1)
        cn = (dist_an * smw(-dist_an, is_neg)).sum(1)
        x = cn - fp
        return float(np.mean(np.log1p(np.exp(-x)))), int((cn >= fp).sum())

    loss_ref, correct_ref = reference(np.asarray(feats), labels)

    # 1) auto tile sizing: a single aligned block covers the whole small batch.
    loss_fn = build_tcwrt_loss(labels, B, D)
    loss, correct = loss_fn(feats)
    jax.block_until_ready(loss)
    assert abs(float(loss) - loss_ref) < 1e-4, (float(loss), loss_ref)
    assert int(correct) == correct_ref, (int(correct), correct_ref)

    # 2) forced small tile -> 2 grid steps with a ragged (in-kernel masked) last
    #    tile; exercises the no-host-pad streaming path.
    loss_fn_r = build_tcwrt_loss(labels, B, D, tile_rows=16)
    loss_r, correct_r = loss_fn_r(feats)
    jax.block_until_ready(loss_r)
    assert abs(float(loss_r) - loss_ref) < 1e-4, (float(loss_r), loss_ref)
    assert int(correct_r) == correct_ref, (int(correct_r), correct_ref)

    # 3) native bf16 streaming (halves HBM traffic); accumulation stays f32.
    loss_fn_b = build_tcwrt_loss(labels, B, D, feat_dtype=jnp.bfloat16,
                                 tile_rows=16)
    loss_b, correct_b = loss_fn_b(feats.astype(jnp.bfloat16))
    jax.block_until_ready(loss_b)
    assert np.isfinite(float(loss_b)), float(loss_b)
    assert abs(float(loss_b) - loss_ref) < 0.15, (float(loss_b), loss_ref)
    assert 0 <= int(correct_b) <= n

    print("KERNEL_OK")
</pallas_src>

<mosaic_0001>
module attributes {stable_mosaic.version = 11 : i64} {
  func.func @_tcwrt_kernel(%arg0: i32, %arg1: memref<1x16xi32, #tpu.memory_space<vmem>>, %arg2: memref<24x32xf32, #tpu.memory_space<vmem>>, %arg3: memref<1x1xf32, #tpu.memory_space<vmem>>, %arg4: memref<1x1xi32, #tpu.memory_space<vmem>>, %arg5: memref<16x32xf32, #tpu.memory_space<vmem>>) attributes {dimension_semantics = [#tpu.dimension_semantics<arbitrary>], iteration_bounds = array<i64: 1>, scalar_prefetch = 0 : i64, scratch_operands = 1 : i64, tpu.core_type = #tpu.core_type<tc>, window_params = [{pipeline_mode = #tpu.pipeline_mode<synchronous>, transform_indices = @transform_0, window_bounds = array<i64: 1, 16>}, {transform_indices = @transform_1, window_bounds = array<i64: 24, 32>}, {pipeline_mode = #tpu.pipeline_mode<synchronous>, transform_indices = @transform_2, window_bounds = array<i64: 1, 1>}, {pipeline_mode = #tpu.pipeline_mode<synchronous>, transform_indices = @transform_3, window_bounds = array<i64: 1, 1>}]} {
    %c0_i32 = arith.constant 0 : i32
    %0 = arith.cmpi eq, %arg0, %c0_i32 : i32
    %1 = arith.extui %0 : i1 to i32
    %c0_i32_0 = arith.constant 0 : i32
    %2 = arith.cmpi ne, %1, %c0_i32_0 : i32
    scf.if %2 {
      %cst_9 = arith.constant 0.000000e+00 : f32
      %25 = vector.broadcast %cst_9 : f32 to vector<16x32xf32>
      %c0_10 = arith.constant 0 : index
      %c0_11 = arith.constant 0 : index
      %26 = vector.load %arg5[%c0_10, %c0_11] : memref<16x32xf32, #tpu.memory_space<vmem>>, vector<16x32xf32>
      tpu.vector_store %arg5[%c0_10, %c0_11], %25 {strides = array<i32>} : memref<16x32xf32, #tpu.memory_space<vmem>>, vector<16x32xf32>,
    } else {
    }
    %c0 = arith.constant 0 : index
    %c0_1 = arith.constant 0 : index
    %3 = vector.load %arg2[%c0, %c0_1] : memref<24x32xf32, #tpu.memory_space<vmem>>, vector<24x32xf32>
    %c24_i32 = arith.constant 24 : i32
    %4 = arith.muli %arg0, %c24_i32 : i32
    %5 = tpu.iota {dimensions = array<i32: 1>} : vector<16x24xi32>
    %6 = vector.broadcast %4 : i32 to vector<16x24xi32>
    %7 = arith.addi %6, %5 : vector<16x24xi32>
    %8 = tpu.iota {dimensions = array<i32: 0>} : vector<16x24xi32>
    %c2_i32 = arith.constant 2 : i32
    %9 = vector.broadcast %c2_i32 : i32 to vector<16x24xi32>
    %10 = arith.muli %8, %9 : vector<16x24xi32>
    %11 = arith.cmpi sge, %7, %10 : vector<16x24xi32>
    %c2_i32_2 = arith.constant 2 : i32
    %12 = vector.broadcast %c2_i32_2 : i32 to vector<16x24xi32>
    %13 = arith.addi %10, %12 : vector<16x24xi32>
    %14 = arith.cmpi slt, %7, %13 : vector<16x24xi32>
    %15 = arith.andi %11, %14 : vector<16x24xi1>
    %16 = arith.extui %15 : vector<16x24xi1> to vector<16x24xi32>
    %17 = arith.sitofp %16 : vector<16x24xi32> to vector<16x24xf32>
    %c0_3 = arith.constant 0 : index
    %c0_4 = arith.constant 0 : index
    %18 = vector.load %arg5[%c0_3, %c0_4] : memref<16x32xf32, #tpu.memory_space<vmem>>, vector<16x32xf32>
    %cst = arith.constant dense<0.000000e+00> : vector<16x32xf32>
    %19 = tpu.matmul %17, %3, %cst {dimension_numbers = #tpu.dot_dimension_numbers<[1], [0], [0], [1], [0, 0, 1, 1], [], []>} : vector<16x24xf32>, vector<24x32xf32>, vector<16x32xf32> -> vector<16x32xf32>
    %20 = arith.addf %18, %19 : vector<16x32xf32>
    %c0_5 = arith.constant 0 : index
    %c0_6 = arith.constant 0 : index
    %21 = vector.load %arg5[%c0_5, %c0_6] : memref<16x32xf32, #tpu.memory_space<vmem>>, vector<16x32xf32>
    tpu.vector_store %arg5[%c0_5, %c0_6], %20 {strides = array<i32>} : memref<16x32xf32, #tpu.memory_space<vmem>>, vector<16x32xf32>,
    %c0_i32_7 = arith.constant 0 : i32
    %22 = arith.cmpi eq, %arg0, %c0_i32_7 : i32
    %23 = arith.extui %22 : i1 to i32
    %c0_i32_8 = arith.constant 0 : i32
    %24 = arith.cmpi ne, %23, %c0_i32_8 : i32
    scf.if %24 {
      %c0_9 = arith.constant 0 : index
      %c0_10 = arith.constant 0 : index
      %25 = vector.load %arg5[%c0_9, %c0_10] : memref<16x32xf32, #tpu.memory_space<vmem>>, vector<16x32xf32>
      %cst_11 = arith.constant 5.000000e-01 : f32
      %26 = vector.broadcast %cst_11 : f32 to vector<16x32xf32>
      %27 = arith.mulf %25, %26 : vector<16x32xf32>
      %28 = tpu.iota {dimensions = array<i32: 0>} : vector<16x1xi32>
      %c12_i32 = arith.constant 12 : i32
      %29 = vector.broadcast %c12_i32 : i32 to vector<16x1xi32>
      %30 = arith.cmpi slt, %28, %29 : vector<16x1xi32>
      %cst_12 = arith.constant 0.000000e+00 : f32
      %31 = vector.shape_cast %30 : vector<16x1xi1> to vector<16x1xi1>
      %32 = vector.broadcast %31 : vector<16x1xi1> to vector<16x32xi1>
      %33 = vector.broadcast %cst_12 : f32 to vector<16x32xf32>
      %34 = arith.select %32, %27, %33 : vector<16x32xi1>, vector<16x32xf32>
      %35 = arith.mulf %34, %34 : vector<16x32xf32>
      %cst_13 = arith.constant dense<0.000000e+00> : vector<16xf32>
      %36 = vector.multi_reduction <add>, %35, %cst_13 [1] : vector<16x32xf32> to vector<16xf32>
      %37 = vector.shape_cast %36 : vector<16xf32> to vector<16x1xf32>
      %cst_14 = arith.constant dense<0.000000e+00> : vector<16x16xf32>
      %38 = tpu.matmul %34, %34, %cst_14 {dimension_numbers = #tpu.dot_dimension_numbers<[1], [1], [0], [0], [0, 0, 1, 0], [], []>} : vector<16x32xf32>, vector<16x32xf32>, vector<16x16xf32> -> vector<16x16xf32>
      %39 = tpu.transpose %37, [1, 0] : vector<16x1xf32> -> vector<1x16xf32>
      %40 = vector.broadcast %37 : vector<16x1xf32> to vector<16x16xf32>
      %41 = vector.broadcast %39 : vector<1x16xf32> to vector<16x16xf32>
      %42 = arith.addf %40, %41 : vector<16x16xf32>
      %cst_15 = arith.constant 2.000000e+00 : f32
      %43 = vector.broadcast %cst_15 : f32 to vector<16x16xf32>
      %44 = arith.mulf %43, %38 : vector<16x16xf32>
      %45 = arith.subf %42, %44 : vector<16x16xf32>
      %cst_16 = arith.constant 9.99999996E-13 : f32
      %46 = vector.broadcast %cst_16 : f32 to vector<16x16xf32>
      %47 = arith.maximumf %45, %46 : vector<16x16xf32>
      %48 = math.sqrt %47 : vector<16x16xf32>
      %c0_17 = arith.constant 0 : index
      %c0_18 = arith.constant 0 : index
      %49 = vector.load %arg1[%c0_17, %c0_18] : memref<1x16xi32, #tpu.memory_space<vmem>>, vector<1x16xi32>
      %50 = tpu.iota {dimensions = array<i32: 0>} : vector<16x16xi32>
      %51 = tpu.iota {dimensions = array<i32: 1>} : vector<16x16xi32>
      %c12_i32_19 = arith.constant 12 : i32
      %52 = vector.broadcast %c12_i32_19 : i32 to vector<16x16xi32>
      %53 = arith.cmpi slt, %50, %52 : vector<16x16xi32>
      %c12_i32_20 = arith.constant 12 : i32
      %54 = vector.broadcast %c12_i32_20 : i32 to vector<16x16xi32>
      %55 = arith.cmpi slt, %51, %54 : vector<16x16xi32>
      %56 = arith.andi %53, %55 : vector<16x16xi1>
      %57 = tpu.transpose %49, [1, 0] : vector<1x16xi32> -> vector<16x1xi32>
      %58 = vector.broadcast %57 : vector<16x1xi32> to vector<16x16xi32>
      %59 = vector.broadcast %49 : vector<1x16xi32> to vector<16x16xi32>
      %60 = arith.cmpi eq, %58, %59 : vector<16x16xi32>
      %61 = arith.andi %60, %56 : vector<16x16xi1>
      %62 = arith.extui %61 : vector<16x16xi1> to vector<16x16xi32>
      %63 = arith.sitofp %62 : vector<16x16xi32> to vector<16x16xf32>
      %cst_21 = arith.constant dense<true> : vector<16x16xi1>
      %64 = arith.xori %60, %cst_21 : vector<16x16xi1>
      %65 = arith.andi %64, %56 : vector<16x16xi1>
      %66 = arith.extui %65 : vector<16x16xi1> to vector<16x16xi32>
      %67 = arith.sitofp %66 : vector<16x16xi32> to vector<16x16xf32>
      %68 = arith.mulf %48, %63 : vector<16x16xf32>
      %69 = arith.mulf %48, %67 : vector<16x16xf32>
      %70 = arith.mulf %68, %63 : vector<16x16xf32>
      %cst_22 = arith.constant dense<0xFF800000> : vector<16xf32>
      %71 = vector.multi_reduction <maximumf>, %70, %cst_22 [1] : vector<16x16xf32> to vector<16xf32>
      %72 = vector.shape_cast %71 : vector<16xf32> to vector<16x1xf32>
      %73 = vector.broadcast %72 : vector<16x1xf32> to vector<16x16xf32>
      %74 = arith.subf %68, %73 : vector<16x16xf32>
      %75 = math.exp %74 : vector<16x16xf32>
      %76 = arith.mulf %75, %63 : vector<16x16xf32>
      %cst_23 = arith.constant dense<0.000000e+00> : vector<16xf32>
      %77 = vector.multi_reduction <add>, %76, %cst_23 [1] : vector<16x16xf32> to vector<16xf32>
      %78 = vector.shape_cast %77 : vector<16xf32> to vector<16x1xf32>
      %cst_24 = arith.constant 9.99999997E-7 : f32
      %79 = vector.broadcast %cst_24 : f32 to vector<16x1xf32>
      %80 = arith.addf %78, %79 : vector<16x1xf32>
      %81 = vector.broadcast %80 : vector<16x1xf32> to vector<16x16xf32>
      %82 = arith.divf %76, %81 : vector<16x16xf32>
      %83 = arith.mulf %68, %82 : vector<16x16xf32>
      %cst_25 = arith.constant dense<0.000000e+00> : vector<16xf32>
      %84 = vector.multi_reduction <add>, %83, %cst_25 [1] : vector<16x16xf32> to vector<16xf32>
      %85 = vector.shape_cast %84 : vector<16xf32> to vector<16x1xf32>
      %cst_26 = arith.constant 0.000000e+00 : f32
      %86 = vector.broadcast %cst_26 : f32 to vector<16x16xf32>
      %87 = arith.subf %86, %69 : vector<16x16xf32>
      %88 = arith.mulf %87, %67 : vector<16x16xf32>
      %cst_27 = arith.constant dense<0xFF800000> : vector<16xf32>
      %89 = vector.multi_reduction <maximumf>, %88, %cst_27 [1] : vector<16x16xf32> to vector<16xf32>
      %90 = vector.shape_cast %89 : vector<16xf32> to vector<16x1xf32>
      %cst_28 = arith.constant 0.000000e+00 : f32
      %91 = vector.broadcast %cst_28 : f32 to vector<16x16xf32>
      %92 = arith.subf %91, %69 : vector<16x16xf32>
      %93 = vector.broadcast %90 : vector<16x1xf32> to vector<16x16xf32>
      %94 = arith.subf %92, %93 : vector<16x16xf32>
      %95 = math.exp %94 : vector<16x16xf32>
      %96 = arith.mulf %95, %67 : vector<16x16xf32>
      %cst_29 = arith.constant dense<0.000000e+00> : vector<16xf32>
      %97 = vector.multi_reduction <add>, %96, %cst_29 [1] : vector<16x16xf32> to vector<16xf32>
      %98 = vector.shape_cast %97 : vector<16xf32> to vector<16x1xf32>
      %cst_30 = arith.constant 9.99999997E-7 : f32
      %99 = vector.broadcast %cst_30 : f32 to vector<16x1xf32>
      %100 = arith.addf %98, %99 : vector<16x1xf32>
      %101 = vector.broadcast %100 : vector<16x1xf32> to vector<16x16xf32>
      %102 = arith.divf %96, %101 : vector<16x16xf32>
      %103 = arith.mulf %69, %102 : vector<16x16xf32>
      %cst_31 = arith.constant dense<0.000000e+00> : vector<16xf32>
      %104 = vector.multi_reduction <add>, %103, %cst_31 [1] : vector<16x16xf32> to vector<16xf32>
      %105 = vector.shape_cast %104 : vector<16xf32> to vector<16x1xf32>
      %106 = arith.subf %105, %85 : vector<16x1xf32>
      %cst_32 = arith.constant 0.000000e+00 : f32
      %107 = vector.broadcast %cst_32 : f32 to vector<16x1xf32>
      %108 = arith.subf %107, %106 : vector<16x1xf32>
      %cst_33 = arith.constant 0.000000e+00 : f32
      %109 = vector.broadcast %cst_33 : f32 to vector<16x1xf32>
      %110 = arith.maximumf %108, %109 : vector<16x1xf32>
      %111 = math.absf %108 : vector<16x1xf32>
      %cst_34 = arith.constant 0.000000e+00 : f32
      %112 = vector.broadcast %cst_34 : f32 to vector<16x1xf32>
      %113 = arith.subf %112, %111 : vector<16x1xf32>
      %114 = math.exp %113 : vector<16x1xf32>
      %cst_35 = arith.constant 1.000000e+00 : f32
      %115 = vector.broadcast %cst_35 : f32 to vector<16x1xf32>
      %116 = arith.addf %115, %114 : vector<16x1xf32>
      %117 = math.log %116 : vector<16x1xf32>
      %118 = arith.addf %110, %117 : vector<16x1xf32>
      %119 = tpu.iota {dimensions = array<i32: 0>} : vector<16x1xi32>
      %c12_i32_36 = arith.constant 12 : i32
      %120 = vector.broadcast %c12_i32_36 : i32 to vector<16x1xi32>
      %121 = arith.cmpi slt, %119, %120 : vector<16x1xi32>
      %cst_37 = arith.constant 0.000000e+00 : f32
      %122 = vector.broadcast %cst_37 : f32 to vector<16x1xf32>
      %123 = arith.select %121, %118, %122 : vector<16x1xi1>, vector<16x1xf32>
      %124 = vector.shape_cast %123 : vector<16x1xf32> to vector<1x16x1xf32>
      %cst_38 = arith.constant dense<0.000000e+00> : vector<1xf32>
      %125 = vector.multi_reduction <add>, %124, %cst_38 [1, 2] : vector<1x16x1xf32> to vector<1xf32>
      %126 = vector.shape_cast %125 : vector<1xf32> to vector<1x1x1xf32>
      %127 = vector.extract %126[0, 0, 0] : f32 from vector<1x1x1xf32>
      %128 = vector.broadcast %127 : f32 to vector<1x1xf32>
      %cst_39 = arith.constant 0.0833333358 : f32
      %129 = vector.broadcast %cst_39 : f32 to vector<1x1xf32>
      %130 = arith.mulf %128, %129 : vector<1x1xf32>
      %131 = arith.cmpf oge, %105, %85 : vector<16x1xf32>
      %132 = arith.andi %121, %131 : vector<16x1xi1>
      %133 = arith.extui %132 : vector<16x1xi1> to vector<16x1xi32>
      %134 = vector.shape_cast %133 : vector<16x1xi32> to vector<1x16x1xi32>
      %cst_40 = arith.constant dense<0> : vector<1xi32>
      %135 = vector.multi_reduction <add>, %134, %cst_40 [1, 2] : vector<1x16x1xi32> to vector<1xi32>
      %136 = vector.shape_cast %135 : vector<1xi32> to vector<1x1x1xi32>
      %137 = vector.extract %136[0, 0, 0] : i32 from vector<1x1x1xi32>
      %138 = vector.broadcast %137 : i32 to vector<1x1xi32>
      %c0_41 = arith.constant 0 : index
      %c0_42 = arith.constant 0 : index
      %139 = vector.load %arg3[%c0_41, %c0_42] : memref<1x1xf32, #tpu.memory_space<vmem>>, vector<1x1xf32>
      tpu.vector_store %arg3[%c0_41, %c0_42], %130 {strides = array<i32>} : memref<1x1xf32, #tpu.memory_space<vmem>>, vector<1x1xf32>,
      %c0_43 = arith.constant 0 : index
      %c0_44 = arith.constant 0 : index
      %140 = vector.load %arg4[%c0_43, %c0_44] : memref<1x1xi32, #tpu.memory_space<vmem>>, vector<1x1xi32>
      tpu.vector_store %arg4[%c0_43, %c0_44], %138 {strides = array<i32>} : memref<1x1xi32, #tpu.memory_space<vmem>>, vector<1x1xi32>,
    } else {
    }
    return
  }
  func.func @transform_0(%arg0: i32) -> (i32, i32) {
    %c0_i32 = arith.constant 0 : i32
    %c0_i32_0 = arith.constant 0 : i32
    %c0_i32_1 = arith.constant 0 : i32
    return %c0_i32, %c0_i32_0 : i32, i32
  }
  func.func @transform_1(%arg0: i32) -> (i32, i32) {
    %c0_i32 = arith.constant 0 : i32
    %c0_i32_0 = arith.constant 0 : i32
    return %arg0, %c0_i32 : i32, i32
  }
  func.func @transform_2(%arg0: i32) -> (i32, i32) {
    %c0_i32 = arith.constant 0 : i32
    %c0_i32_0 = arith.constant 0 : i32
    %c0_i32_1 = arith.constant 0 : i32
    return %c0_i32, %c0_i32_0 : i32, i32
  }
  func.func @transform_3(%arg0: i32) -> (i32, i32) {
    %c0_i32 = arith.constant 0 : i32
    %c0_i32_0 = arith.constant 0 : i32
    %c0_i32_1 = arith.constant 0 : i32
    return %c0_i32, %c0_i32_0 : i32, i32
  }
}

</mosaic_0001>

<bundles_post_ra>
// kernel: loss_fn.1
= control target key start
LH: loop header
LB: loop body
LE: loop exit
PB: predicated region body
PF: predicated region fallthrough
CT: control target
= control target key end

     0   :  { %9 = vsyncpa [#allocation4], 0  ;;  %s817_s0 = inlined_call_operand.hbm [shape: s32[1,16], index: 0, kind: input, shape index: {}]   ;;  %s818_s1 = inlined_call_operand.hbm [shape: f32[24,32], index: 1, kind: input, shape index: {}]   ;;  %s819_s2 = inlined_call_operand.hbm [shape: f32[1,1], index: 2, kind: output, shape index: {0}]   ;;  %s820_s3 = inlined_call_operand.hbm [shape: s32[1,1], index: 3, kind: output, shape index: {1}]  }
   0x1   :  { %10 = vsyncpa [#allocation7], 0 }
   0x2   :  { %11 = vsyncpa [#allocation5], 0 }
   0x3   :  { %12 = vsyncpa [#allocation10], 0  ;;  %s18_s14 = sshll.u32 %s817_s0, 4  ;;  %s677_s15 = smov [#allocation3]   ;;  %s19_s14 = int_to_ptr.hbm [resolvable:$true] %s18_s14 }
   0x4   :  { %s20_s16 = sshll.u32 %s677_s15, 4  ;;  %s28_s19 = sshll.u32 %s818_s1, 4  ;;  %s21_s16 = int_to_ptr.vmem [resolvable:$true] %s20_s16  ;;  %s29_s19 = int_to_ptr.hbm [resolvable:$true] %s28_s19 }
   0x5   :  { %23 = dma.hbm_to_vmem [thread:$0]  %s19_s14, 16, %s21_s16, [#allocation4]  }
   0x6   :  { %s678_s20 = smov [#allocation6]   ;;  %s679_s22 = smov 128  }
   0x7   :  { %s30_s21 = sshll.u32 %s678_s20, 4  ;;  %s680_s23 = smov 8   ;;  %s31_s21 = int_to_ptr.vmem [resolvable:$true] %s30_s21 }
   0x8   :  { %36 = dma.hbm_to_vmem [thread:$0]  %s29_s19, 384, %s31_s21, [#allocation7], %s679_s22, %s679_s22, %s680_s23  }
   0x9   :  { %669 = dma.done.wait [#allocation4], 16  }
   0xa   :  { %670 = vsyncadd [#allocation4], 4294967280 }
   0xb   :  { %671 = dma.done.wait [#allocation7], 384  }
   0xc   :  { %672 = vsyncadd [#allocation7], 4294966912  ;;  %v56_v0 = vlaneseq  ;;  %vm49_vm0 = vcmask 261120   ;;  %v681_v1 = vmov 0.0   ;;  %v54_v8 = vld [vmem:[#allocation6 + $0x10] sm:$0xff]  ;;  %v53_v9 = vld [vmem:[#allocation6 + $0x8] sm:$0xff] }
   0xd   :  { %50 = vst.msk [vmem:[#allocation2] sm:$0xff] %vm49_vm0, %v681_v1  ;;  %99 = vmatpush.msra.mxu0 %v54_v8  ;;  %524 = vmatpush.msra.mxu3 %v54_v8  ;;  %v52_v11 = vld [vmem:[#allocation6] sm:$0xff]  ;;  %vm79_vm5 = vcmask 195584   ;;  %v231_v14 = vld [vmem:[#allocation3] sm:$0x1]  ;;  %v682_v30 = vmov 0  }
   0xe   :  { %v714_v2 = vand.u32 127, %v56_v0  ;;  %v61_v3 = vshrl.u32 %v56_v0, 7  ;;  %51 = vst.msk [vmem:[#allocation2 + $0x8] sm:$0xff] %vm49_vm0, %v681_v1  ;;  %235 = vxpose.xlu1.b32.start.end [1/1] (short) (narrow) %v231_v14, 16  ;;  %542 = vset.pattern.permute.xlu2 %v682_v30  ;;  %v544_v51 = vld [vmem:[#allocation3] ss:$0 sm:$0xff] }
   0xf   :  { %100 = vmatpush.msra.mxu0 %v53_v9  ;;  %525 = vmatpush.msra.mxu3 %v53_v9  ;;  %vm683_vm12 = vmmov 1   ;;  %s684_s0 = smov [#allocation9]   ;;  %s496_s26 = sshll.u32 %s820_s3, 4  ;;  %s497_s26 = int_to_ptr.hbm [resolvable:$true] %s496_s26 }
  0x10   :  { %v63_v4 = vmul.u32 2, %v61_v3  ;;  %v718_v5 = vadd.s32 8, %v61_v3  ;;  %543 = vset.pattern.permute.xlu0 %v682_v30  ;;  %vm232_vm10 = vcmp.lt.s32.totalorder %v714_v2, 12  ;;  %s494_s1 = sshll.u32 %s684_s0, 4  ;;  %s685_s27 = smov [#allocation8]   ;;  %s495_s1 = int_to_ptr.vmem [resolvable:$true] %s494_s1 }
  0x11   :  { %101 = vmatpush.msra.mxu0 %v52_v11  ;;  %526 = vmatpush.msra.mxu3 %v52_v11  ;;  %s483_s28 = sshll.u32 %s685_s27, 4  ;;  %s485_s4 = sshll.u32 %s819_s2, 4  ;;  %s484_s28 = int_to_ptr.vmem [resolvable:$true] %s483_s28  ;;  %s486_s4 = int_to_ptr.hbm [resolvable:$true] %s485_s4 }
  0x12   :  { %vm65_vm1 = vcmp.ge.s32.totalorder %v714_v2, %v63_v4  ;;  %v67_v6 = vadd.s32 2, %v63_v4  ;;  %v64_v7 = vmul.u32 2, %v718_v5  ;;  %vm122_vm8 = vcmp.lt.s32.totalorder %v718_v5, 12 }
  0x13   :  { %vm747_vm11 = vmand %vm122_vm8, %vm232_vm10 }
  0x14   :  { %vm69_vm2 = vcmp.lt.s32.totalorder %v714_v2, %v67_v6  ;;  %vm66_vm3 = vcmp.ge.s32.totalorder %v714_v2, %v64_v7  ;;  %v68_v10 = vadd.s32 2, %v64_v7  ;;  %v77_v15 = vld [vmem:[#allocation2] sm:$0xff] }
  0x15   :  { %vm71_vm4 = vmand %vm65_vm1, %vm69_vm2  ;;  %v78_v18 = vld [vmem:[#allocation2 + $0x8] sm:$0xff] }
  0x16   :  { %v512_v12 = vsel %vm71_vm4, 1.0, %v681_v1  ;;  %vm70_vm6 = vcmp.lt.s32.totalorder %v714_v2, %v68_v10 }
  0x17   :  { %vm72_vm7 = vmand %vm66_vm3, %vm70_vm6  ;;  %514 = vmatmul.msk.f32.vlgmr.msra.gmra.mxu0 %vm79_vm5, %v512_v12 }
  0x18   :  { %v513_v13 = vsel %vm72_vm7, 1.0, %v681_v1  ;;  %vm296_vm7 = vcmask 130048  }
  0x19   :  { %515 = vmatmul.msk.f32.vlgmr.msra.gmra.mxu3 %vm79_vm5, %v513_v13 }
  0x94   :  { %v103_v16 = vpop.f32.mrf.mxu0 }
  0x95   :  { %v109_v17 = vadd.f32 %v103_v16, %v77_v15 }
  0x97   :  { %112 = vst.msk [vmem:[#allocation2] sm:$0xff] %vm49_vm0, %v109_v17 }
  0x9c   :  { %v106_v19 = vpop.f32.mrf.mxu3 }
  0x9d   :  { %v110_v20 = vadd.f32 %v106_v19, %v78_v18 }
  0x9e   :  { %v117_v21 = vld [vmem:[#allocation2] sm:$0xff] }
  0x9f   :  { %113 = vst.msk [vmem:[#allocation2 + $0x8] sm:$0xff] %vm49_vm0, %v110_v20  ;;  %v119_v22 = vmul.f32 0.5, %v117_v21 }
  0xa1   :  { %v129_v23 = vmul.f32 %v119_v22, %v119_v22 }
  0xa3   :  { %v131_v24 = vsel %vm49_vm0, %v129_v23, 0.0 }
  0xa4   :  { %132 = vadd.xlane.f32.xlu0 %v131_v24 }
  0xa6   :  { %v118_v25 = vld [vmem:[#allocation2 + $0x8] sm:$0xff] }
  0xa7   :  { %v120_v26 = vmul.f32 0.5, %v118_v25 }
  0xa9   :  { %v128_v27 = vsel %vm122_vm8, %v120_v26, 0.0 }
  0xaa   :  { %516 = vmatpush.xpose.msk.msra.mxu1 %vm49_vm0, %v128_v27  ;;  %527 = vmatpush.xpose.msk.msra.mxu2 %vm49_vm0, %v128_v27  ;;  %v130_v28 = vmul.f32 %v128_v27, %v128_v27 }
  0xac   :  { %v134_v29 = vsel %vm49_vm0, %v130_v28, 0.0 }
  0xad   :  { %135 = vadd.xlane.f32.xlu0 %v134_v29 }
  0xae   :  { %517 = vmatpush.xpose.msk.msra.mxu1 %vm49_vm0, %v119_v22  ;;  %528 = vmatpush.xpose.msk.msra.mxu2 %vm49_vm0, %v119_v22 }
  0xb1   :  { %518 = vmatmul.msk.f32.vlgmr.msra.gmra.mxu1 %vm49_vm0, %v119_v22  ;;  %519 = vmatmul.msk.f32.vlgmr.msra.gmra.mxu2 %vm49_vm0, %v128_v27 }
  0xb2   :  { %v251_v33 = vpop.trf.xlu1 }
  0xba   :  { %v252_v34 = vpop.trf.xlu1 }
  0xbb   :  { %271 = vperm.xlu2 %542, %v252_v34  }
  0xc3   :  { %268 = vperm.xlu2 %542, %v251_v33  }
 0x115   :  { %v272_v47 = vpop.permute.xlu2 %271 }
 0x116   :  { %vm275_vm9 = vcmp.eq.s32.totalorder %v272_v47, %v544_v51 }
 0x117   :  { %v133_v31 = vpop.xlane.xlu0 %132  ;;  %vm283_vm13 = vmxor %vm275_vm9, %vm683_vm12 }
 0x118   :  { %166 = vxpose.xlu1.b32.start [1/2] (short) (narrow) %v133_v31, 8  ;;  %vm277_vm14 = vmand %vm275_vm9, %vm747_vm11 }
 0x119   :  { %vm285_vm15 = vmand %vm283_vm13, %vm747_vm11  ;;  %v521_v3 = vsel %vm277_vm14, 1.0, %v681_v1 }
 0x11a   :  { %v523_v6 = vsel %vm285_vm15, 1.0, %v681_v1 }
 0x11d   :  { %v269_v60 = vpop.permute.xlu2 %268 }
 0x11e   :  { %vm274_vm0 = vcmp.eq.s32.totalorder %v269_v60, %v544_v51 }
 0x11f   :  { %vm276_vm5 = vmand %vm274_vm0, %vm232_vm10 }
 0x120   :  { %v136_v32 = vpop.xlane.xlu0 %135  ;;  %vm282_vm6 = vmxor %vm274_vm0, %vm683_vm12  ;;  %v520_v16 = vsel %vm276_vm5, 1.0, %v681_v1 }
 0x121   :  { %167 = vxpose.xlu1.b32.end [2/2] (short) (narrow) %v136_v32, 8  ;;  %vm284_vm9 = vmand %vm282_vm6, %vm232_vm10 }
 0x122   :  { %v522_v21 = vsel %vm284_vm9, 1.0, %v681_v1 }
 0x12e   :  { %v160_v35 = vpop.f32.mrf.mxu1 }
 0x12f   :  { %v201_v39 = vmul.f32 2.0, %v160_v35 }
 0x134   :  { %v163_v36 = vpop.f32.mrf.mxu2 }
 0x135   :  { %v202_v40 = vmul.f32 2.0, %v163_v36 }
 0x1bd   :  { %v182_v37 = vpop.trf.xlu1 }
 0x1be   :  { %v198_v38 = vperm.slane %v182_v37, 0 }
 0x1c0   :  { %v199_v41 = vadd.f32 %v198_v38, %v133_v31  ;;  %v200_v42 = vadd.f32 %v198_v38, %v136_v32 }
 0x1c2   :  { %v203_v43 = vsub.f32 %v199_v41, %v201_v39  ;;  %v204_v44 = vsub.f32 %v200_v42, %v202_v40 }
 0x1c4   :  { %v205_v45 = vmax.f32 %v203_v43, 1e-12  ;;  %v206_v46 = vmax.f32 %v204_v44, 1e-12 }
 0x1c6   :  { %545 = vrsqrt.f32 %v205_v45  ;;  %vm226_vm1 = vcmp.eq.f32.partialorder %v206_v46, inf  ;;  %v229_v4 = vand.u32 2147483648, %v206_v46  ;;  %vm214_vm2 = vcmp.eq.f32.partialorder %v205_v45, inf }
 0x1c7   :  { %547 = vrsqrt.f32 %v206_v46  ;;  %vm228_vm3 = vcmp.eq.f32.partialorder %v206_v46, 0.0  ;;  %v217_v10 = vand.u32 2147483648, %v205_v45  ;;  %vm216_vm4 = vcmp.eq.f32.partialorder %v205_v45, 0.0 }
 0x1cc   :  { %v546_v48 = vpop.eup %545 }
 0x1cd   :  { %v548_v49 = vpop.eup %547  ;;  %v208_v50 = vmul.f32 %v546_v48, %v205_v45 }
 0x1ce   :  { %v220_v52 = vmul.f32 %v548_v49, %v206_v46 }
 0x1cf   :  { %v209_v53 = vmul.f32 %v546_v48, %v208_v50 }
 0x1d0   :  { %v221_v54 = vmul.f32 %v548_v49, %v220_v52 }
 0x1d1   :  { %v210_v55 = vmul.f32 0.5, %v209_v53 }
 0x1d2   :  { %v222_v57 = vmul.f32 0.5, %v221_v54 }
 0x1d3   :  { %v211_v58 = vsub.f32 1.5, %v210_v55 }
 0x1d4   :  { %v223_v59 = vsub.f32 1.5, %v222_v57 }
 0x1d5   :  { %v212_v61 = vmul.f32 %v546_v48, %v211_v58 }
 0x1d6   :  { %v224_v62 = vmul.f32 %v548_v49, %v223_v59 }
 0x1d7   :  { %v213_v63 = vmul.f32 %v212_v61, %v205_v45 }
 0x1d8   :  { %v225_v0 = vmul.f32 %v224_v62, %v206_v46 }
 0x1d9   :  { %v215_v8 = vsel %vm214_vm2, %v205_v45, %v213_v63 }
 0x1da   :  { %v227_v7 = vsel %vm226_vm1, %v206_v46, %v225_v0  ;;  %v218_v13 = vsel %vm216_vm4, %v217_v10, %v215_v8 }
 0x1db   :  { %v230_v9 = vsel %vm228_vm3, %v229_v4, %v227_v7  ;;  %v772_v17 = vmul.f32 %v520_v16, %v218_v13  ;;  %v777_v22 = vmul.f32 %v522_v21, %v218_v13 }
 0x1dc   :  { %v758_v11 = vmul.f32 %v521_v3, %v230_v9  ;;  %v760_v12 = vmul.f32 %v523_v6, %v230_v9 }
 0x1dd   :  { %v294_v23 = vmul.f32 %v520_v16, %v772_v17  ;;  %v357_v2 = vsub.f32 0.0, %v777_v22 }
 0x1de   :  { %v295_v14 = vmul.f32 %v521_v3, %v758_v11  ;;  %v358_v15 = vsub.f32 0.0, %v760_v12 }
 0x1df   :  { %v297_v24 = vsel %vm296_vm7, %v294_v23, -inf  ;;  %v359_v25 = vmul.f32 %v522_v21, %v357_v2 }
 0x1e0   :  { %v300_v18 = vsel %vm296_vm7, %v295_v14, -inf  ;;  %v360_v19 = vmul.f32 %v523_v6, %v358_v15 }
 0x1e1   :  { %301 = vmax.xlane.f32.xlu0 %v300_v18  ;;  %v361_v26 = vsel %vm296_vm7, %v359_v25, -inf }
 0x1e2   :  { %v364_v20 = vsel %vm296_vm7, %v360_v19, -inf }
 0x1e3   :  { %365 = vmax.xlane.f32.xlu2 %v364_v20 }
 0x1e9   :  { %298 = vmax.xlane.f32.xlu0 %v297_v24 }
 0x1f1   :  { %362 = vmax.xlane.f32.xlu0 %v361_v26 }
 0x254   :  { %v302_v27 = vpop.xlane.xlu0 %301 }
 0x255   :  { %v304_v28 = vsub.f32 %v758_v11, %v302_v27 }
 0x256   :  { %v366_v1 = vpop.xlane.xlu2 %365 }
 0x257   :  { %v307_v29 = vmul.f32 1.442695, %v304_v28  ;;  %v368_v32 = vsub.f32 %v358_v15, %v366_v1 }
 0x259   :  { %549 = vpow2.f32 %v307_v29  ;;  %v371_v37 = vmul.f32 1.442695, %v368_v32 }
 0x25c   :  { %v299_v31 = vpop.xlane.xlu0 %298 }
 0x25d   :  { %v303_v33 = vsub.f32 %v772_v17, %v299_v31 }
 0x25f   :  { %v550_v34 = vpop.eup %549  ;;  %v305_v35 = vmul.f32 1.442695, %v303_v33 }
 0x260   :  { %v310_v36 = vmul.f32 %v550_v34, %v521_v3 }
 0x261   :  { %551 = vpow2.f32 %v305_v35 }
 0x262   :  { %v314_v38 = vsel %vm296_vm7, %v310_v36, 0.0  ;;  %553 = vpow2.f32 %v371_v37 }
 0x263   :  { %315 = vadd.xlane.f32.xlu1 %v314_v38 }
 0x264   :  { %v363_v39 = vpop.xlane.xlu0 %362 }
 0x265   :  { %v367_v40 = vsub.f32 %v357_v2, %v363_v39 }
 0x267   :  { %v552_v41 = vpop.eup %551  ;;  %v369_v43 = vmul.f32 1.442695, %v367_v40 }
 0x268   :  { %v309_v42 = vmul.f32 %v552_v41, %v520_v16  ;;  %v554_v45 = vpop.eup %553 }
 0x269   :  { %555 = vpow2.f32 %v369_v43  ;;  %v787_v46 = vmul.f32 %v554_v45, %v523_v6 }
 0x26a   :  { %v311_v44 = vsel %vm296_vm7, %v309_v42, 0.0 }
 0x26b   :  { %312 = vadd.xlane.f32.xlu0 %v311_v44  ;;  %v378_v47 = vsel %vm296_vm7, %v787_v46, 0.0 }
 0x26f   :  { %v556_v48 = vpop.eup %555 }
 0x270   :  { %v791_v49 = vmul.f32 %v556_v48, %v522_v21 }
 0x272   :  { %v375_v50 = vsel %vm296_vm7, %v791_v49, 0.0 }
 0x273   :  { %379 = vadd.xlane.f32.xlu0 %v378_v47 }
 0x27b   :  { %376 = vadd.xlane.f32.xlu0 %v375_v50 }
 0x2d6   :  { %v316_v51 = vpop.xlane.xlu1 %315 }
 0x2d7   :  { %v318_v52 = vadd.f32 1e-06, %v316_v51 }
 0x2d9   :  { %557 = vrcp.f32 %v318_v52  ;;  %v345_v58 = vand.u32 2147483648, %v318_v52  ;;  %v343_v60 = vand.u32 2147483647, %v318_v52  ;;  %vm339_vm11 = vweird.f32 %v318_v52 }
 0x2db   :  { %v346_v3 = vor.u32 1.1754944e-38, %v345_v58  ;;  %vm344_vm13 = vcmp.eq.f32.partialorder %v343_v60, 8.507059e+37 }
 0x2de   :  { %v313_v53 = vpop.xlane.xlu0 %312 }
 0x2df   :  { %v558_v54 = vpop.eup %557  ;;  %v317_v55 = vadd.f32 1e-06, %v313_v53 }
 0x2e0   :  { %v335_v56 = vmul.f32 %v558_v54, %v318_v52  ;;  %vm340_vm10 = vweird.f32 %v558_v54 }
 0x2e1   :  { %559 = vrcp.f32 %v317_v55  ;;  %vm341_vm12 = vmor %vm339_vm11, %vm340_vm10  ;;  %v330_v10 = vand.u32 2147483648, %v317_v55  ;;  %v328_v15 = vand.u32 2147483647, %v317_v55  ;;  %vm324_vm15 = vweird.f32 %v317_v55 }
 0x2e2   :  { %v336_v57 = vsub.f32 1.0, %v335_v56 }
 0x2e3   :  { %v331_v23 = vor.u32 1.1754944e-38, %v330_v10  ;;  %vm329_vm1 = vcmp.eq.f32.partialorder %v328_v15, 8.507059e+37 }
 0x2e4   :  { %v337_v59 = vmul.f32 %v558_v54, %v336_v57 }
 0x2e6   :  { %v380_v61 = vpop.xlane.xlu0 %379  ;;  %v338_v62 = vadd.f32 %v558_v54, %v337_v59 }
 0x2e7   :  { %v560_v63 = vpop.eup %559  ;;  %v382_v0 = vadd.f32 1e-06, %v380_v61 }
 0x2e8   :  { %v320_v4 = vmul.f32 %v560_v63, %v317_v55  ;;  %v342_v6 = vsel %vm341_vm12, %v558_v54, %v338_v62  ;;  %vm325_vm14 = vweird.f32 %v560_v63 }
 0x2e9   :  { %561 = vrcp.f32 %v382_v0  ;;  %v347_v7 = vsel %vm344_vm13, %v346_v3, %v342_v6  ;;  %vm326_vm0 = vmor %vm324_vm15, %vm325_vm14  ;;  %v409_v27 = vand.u32 2147483648, %v382_v0  ;;  %v407_v1 = vand.u32 2147483647, %v382_v0 }
 0x2ea   :  { %v321_v8 = vsub.f32 1.0, %v320_v4  ;;  %v348_v9 = vmul.f32 %v347_v7, %v310_v36  ;;  %vm403_vm3 = vweird.f32 %v382_v0 }
 0x2eb   :  { %v410_v34 = vor.u32 1.1754944e-38, %v409_v27  ;;  %vm408_vm5 = vcmp.eq.f32.partialorder %v407_v1, 8.507059e+37 }
 0x2ec   :  { %v350_v13 = vmul.f32 %v348_v9, %v758_v11  ;;  %v322_v14 = vmul.f32 %v560_v63, %v321_v8 }
 0x2ee   :  { %v377_v16 = vpop.xlane.xlu0 %376  ;;  %v354_v18 = vsel %vm296_vm7, %v350_v13, 0.0  ;;  %v323_v19 = vadd.f32 %v560_v63, %v322_v14 }
 0x2ef   :  { %v562_v20 = vpop.eup %561  ;;  %v381_v21 = vadd.f32 1e-06, %v377_v16  ;;  %355 = vadd.xlane.f32.xlu2 %v354_v18 }
 0x2f0   :  { %v399_v24 = vmul.f32 %v562_v20, %v382_v0  ;;  %v327_v2 = vsel %vm326_vm0, %v560_v63, %v323_v19  ;;  %vm404_vm2 = vweird.f32 %v562_v20 }
 0x2f1   :  { %563 = vrcp.f32 %v381_v21  ;;  %v332_v25 = vsel %vm329_vm1, %v331_v23, %v327_v2  ;;  %vm405_vm4 = vmor %vm403_vm3, %vm404_vm2  ;;  %v394_v40 = vand.u32 2147483648, %v381_v21  ;;  %vm388_vm9 = vweird.f32 %v381_v21 }
 0x2f2   :  { %v400_v26 = vsub.f32 1.0, %v399_v24  ;;  %v333_v11 = vmul.f32 %v332_v25, %v309_v42  ;;  %v392_v42 = vand.u32 2147483647, %v381_v21 }
 0x2f3   :  { %v395_v45 = vor.u32 1.1754944e-38, %v394_v40 }
 0x2f4   :  { %v349_v28 = vmul.f32 %v333_v11, %v772_v17  ;;  %v401_v29 = vmul.f32 %v562_v20, %v400_v26  ;;  %vm393_vm11 = vcmp.eq.f32.partialorder %v392_v42, 8.507059e+37 }
 0x2f6   :  { %v351_v31 = vsel %vm296_vm7, %v349_v28, 0.0  ;;  %v402_v32 = vadd.f32 %v562_v20, %v401_v29 }
 0x2f7   :  { %v564_v33 = vpop.eup %563  ;;  %352 = vadd.xlane.f32.xlu2 %v351_v31 }
 0x2f8   :  { %v384_v35 = vmul.f32 %v564_v33, %v381_v21  ;;  %v406_v36 = vsel %vm405_vm4, %v562_v20, %v402_v32  ;;  %vm389_vm6 = vweird.f32 %v564_v33 }
 0x2f9   :  { %v411_v37 = vsel %vm408_vm5, %v410_v34, %v406_v36  ;;  %vm390_vm10 = vmor %vm388_vm9, %vm389_vm6 }
 0x2fa   :  { %v385_v38 = vsub.f32 1.0, %v384_v35  ;;  %v412_v39 = vmul.f32 %v411_v37, %v787_v46 }
 0x2fc   :  { %v414_v17 = vmul.f32 %v412_v39, %v760_v12  ;;  %v386_v41 = vmul.f32 %v564_v33, %v385_v38 }
 0x2fe   :  { %v418_v43 = vsel %vm296_vm7, %v414_v17, 0.0  ;;  %v387_v44 = vadd.f32 %v564_v33, %v386_v41 }
 0x2ff   :  { %419 = vadd.xlane.f32.xlu0 %v418_v43 }
 0x300   :  { %v391_v47 = vsel %vm390_vm10, %v564_v33, %v387_v44 }
 0x301   :  { %v396_v48 = vsel %vm393_vm11, %v395_v45, %v391_v47 }
 0x302   :  { %v397_v50 = vmul.f32 %v396_v48, %v791_v49 }
 0x304   :  { %v413_v46 = vmul.f32 %v397_v50, %v777_v22 }
 0x306   :  { %v415_v51 = vsel %vm296_vm7, %v413_v46, 0.0  ;;  %vm445_vm7 = vcmask 7168  }
 0x307   :  { %416 = vadd.xlane.f32.xlu0 %v415_v51 }
 0x362   :  { %v356_v12 = vpop.xlane.xlu2 %355 }
 0x36a   :  { %v353_v57 = vpop.xlane.xlu2 %352 }
 0x372   :  { %v420_v52 = vpop.xlane.xlu0 %419 }
 0x373   :  { %v422_v53 = vsub.f32 %v420_v52, %v356_v12  ;;  %vm461_vm12 = vcmp.ge.f32.partialorder %v420_v52, %v356_v12 }
 0x374   :  { %vm463_vm13 = vmand %vm122_vm8, %vm461_vm12 }
 0x375   :  { %v424_v54 = vsub.f32 0.0, %v422_v53  ;;  %v465_v22 = vsel %vm463_vm13, 1, %v682_v30 }
 0x377   :  { %v428_v55 = vand.u32 2147483647, %v424_v54  ;;  %v426_v13 = vmax.f32 %v424_v54, 0.0 }
 0x379   :  { %v430_v56 = vsub.f32 0.0, %v428_v55 }
 0x37a   :  { %v417_v58 = vpop.xlane.xlu0 %416 }
 0x37b   :  { %v433_v59 = vmul.f32 1.442695, %v430_v56  ;;  %v421_v60 = vsub.f32 %v417_v58, %v353_v57  ;;  %vm460_vm14 = vcmp.ge.f32.partialorder %v417_v58, %v353_v57 }
 0x37c   :  { %v464_v49 = vsel %vm460_vm14, 1, %v682_v30 }
 0x37d   :  { %565 = vpow2.f32 %v433_v59  ;;  %v423_v61 = vsub.f32 0.0, %v421_v60  ;;  %v466_v62 = vadd.s32 %v465_v22, %v464_v49 }
 0x37f   :  { %v427_v63 = vand.u32 2147483647, %v423_v61  ;;  %v425_v16 = vmax.f32 %v423_v61, 0.0  ;;  %v467_v24 = vrot.slane %v466_v62, 4 }
 0x381   :  { %v429_v0 = vsub.f32 0.0, %v427_v63  ;;  %v468_v2 = vadd.s32 %v467_v24, %v466_v62 }
 0x383   :  { %v566_v3 = vpop.eup %565  ;;  %v431_v4 = vmul.f32 1.442695, %v429_v0  ;;  %v469_v26 = vrot.slane %v468_v2, 2 }
 0x384   :  { %v436_v6 = vadd.f32 1.0, %v566_v3 }
 0x385   :  { %567 = vpow2.f32 %v431_v4  ;;  %v470_v28 = vadd.s32 %v469_v26, %v468_v2 }
 0x386   :  { %569 = vlog2.f32 %v436_v6 }
 0x387   :  { %v471_v31 = vrot.slane %v470_v28, 1 }
 0x389   :  { %v472_v5 = vadd.s32 %v471_v31, %v470_v28 }
 0x38b   :  { %v568_v7 = vpop.eup %567 }
 0x38c   :  { %v570_v8 = vpop.eup %569  ;;  %v435_v9 = vadd.f32 1.0, %v568_v7 }
 0x38d   :  { %v440_v10 = vmul.f32 0.6931472, %v570_v8 }
 0x38e   :  { %571 = vlog2.f32 %v435_v9 }
 0x38f   :  { %v442_v14 = vadd.f32 %v440_v10, %v426_v13 }
 0x391   :  { %v444_v18 = vsel %vm122_vm8, %v442_v14, 0.0  ;;  %vm475_vm8 = vcmask 0  }
 0x392   :  { %v447_v21 = vsel %vm445_vm7, %v444_v18, 0.0 }
 0x394   :  { %v572_v15 = vpop.eup %571 }
 0x395   :  { %v438_v30 = vmul.f32 0.6931472, %v572_v15 }
 0x397   :  { %v441_v19 = vadd.f32 %v438_v30, %v425_v16 }
 0x399   :  { %v446_v20 = vsel %vm445_vm7, %v441_v19, 0.0 }
 0x39a   :  { %v448_v23 = vadd.f32 %v447_v21, %v446_v20 }
 0x39c   :  { %449 = vadd.xlane.f32.xlu2 %v448_v23 }
 0x40f   :  { %v450_v25 = vpop.xlane.xlu2 %449 }
 0x410   :  { %v451_v11 = vrot.slane %v450_v25, 4 }
 0x412   :  { %v452_v27 = vadd.f32 %v451_v11, %v450_v25 }
 0x414   :  { %v453_v29 = vrot.slane %v452_v27, 2 }
 0x416   :  { %v454_v1 = vadd.f32 %v453_v29, %v452_v27 }
 0x418   :  { %v455_v32 = vrot.slane %v454_v1, 1 }
 0x41a   :  { %v456_v33 = vadd.f32 %v455_v32, %v454_v1 }
 0x41c   :  { %529 = vpush %v456_v33 }
 0x41d   :  { %531 = vpush %v472_v5 }
 0x44d   :  { %s530_s5 = spop %529 }
 0x44e   :  { %v458_v34 = vstv %s530_s5  ;;  %s532_s6 = spop %531 }
 0x44f   :  { %v459_v35 = vmul.f32 0.083333336, %v458_v34  ;;  %v474_v36 = vstv %s532_s6 }
 0x450   :  { %477 = vst.msk [vmem:[#allocation9] sm:$0x1] %vm475_vm8, %v474_v36 }
 0x451   :  { %476 = vst.msk [vmem:[#allocation8] sm:$0x1] %vm475_vm8, %v459_v35  ;;  %499 = dma.vmem_to_hbm [thread:$0]  %s495_s1, 16, %s497_s26, [#allocation10]  }
 0x452   :  { %488 = dma.vmem_to_hbm [thread:$0]  %s484_s28, 16, %s486_s4, [#allocation5]  }
 0x453   :  { %673 = dma.done.wait [#allocation5], 16  }
 0x454   :  { %674 = vsyncadd [#allocation5], 4294967280 }
 0x455   :  { %675 = dma.done.wait [#allocation10], 16  }
 0x456   :  { %676 = vsyncadd [#allocation10], 4294967280 }
 0x457   :  { %508 = vsyncpa [#allocation4], 1 }
 0x458   :  { %509 = vsyncpa [#allocation7], 1 }
 0x459   :  { %510 = vsyncpa [#allocation5], 1 }
 0x45a   :  { %511 = vsyncpa [#allocation10], 1 }

</bundles_post_ra>
